<compile_context>
chip_gen: v6e
topology: v6e:2x2x1
jax: 0.10.0
libtpu: 0.0.40
codegen_flags: <defaults>
</compile_context>

<pallas_src>
import jax
import jax.numpy as jnp
from jax.experimental import pallas as pl
from jax.experimental.pallas import tpu as pltpu


# ---------------------------------------------------------------------------
# Pallas kernel
# ---------------------------------------------------------------------------
def ray_diffuser_kernel(
    sa_ref,     # SMEM (BN,)            sqrt(alpha_bar[t]) per image
    sb_ref,     # SMEM (BN,)            sqrt(1 - alpha_bar[t]) per image
    feats_ref,  # VMEM (G, F, HW)       bf16 features (channel-first)
    rays_ref,   # VMEM (G, R, HW)       f32 rays
    eps_ref,    # VMEM (G, R, HW)       f32 noise
    ndc_ref,    # VMEM (G, 2, HW)       f32 ndc coordinates
    wf_ref,     # VMEM (R, F)  bf16     head slice for features, transposed
    wc_ref,     # VMEM (R, R)  bf16     folded (w1 @ w2r)^T
    wn_ref,     # VMEM (R, 2)  f32      head slice for ndc, transposed
    bias_ref,   # VMEM (R, 1)  f32      folded bias (b1 @ w2r + b2)^T
    out_ref,    # VMEM (G, R, HW) f32
):
    step = pl.program_id(0)
    G = out_ref.shape[0]

    # Weights are VMEM-resident across the grid; read (and slice) once per step
    # — broadcast/slice hoisting keeps them out of the per-image loop.
    wf = wf_ref[...]
    wc = wc_ref[...]
    wn = wn_ref[...]
    bias = bias_ref[...]
    wn0 = wn[:, 0:1]
    wn1 = wn[:, 1:2]

    for g in range(G):  # static unroll; G is small and known at trace time
        img = step * G + g
        sa = sa_ref[img]          # scalar path (SMEM) — no vector traffic
        sb = sb_ref[img]

        # (1) forward diffusion (add noise) — f32 elementwise on the VPU.
        rays_noisy = sa * rays_ref[g] + sb * eps_ref[g]            # (R, HW)

        # (2)+(3) folded head, f32 accumulation via the MXU.
        out = jnp.dot(wf, feats_ref[g], preferred_element_type=jnp.float32)
        out = out + jnp.dot(
            wc, rays_noisy.astype(wc.dtype), preferred_element_type=jnp.float32
        )
        # K=2 ndc term on the VPU — a full MXU pass for 2 rows is wasteful.
        ndc = ndc_ref[g]                                           # (2, HW)
        out = out + (wn0 * ndc[0:1, :] + wn1 * ndc[1:2, :] + bias)
        out_ref[g] = out.astype(out_ref.dtype)


# ---------------------------------------------------------------------------
# Helpers
# ---------------------------------------------------------------------------
def _pick_group(bn, per_image_bytes, group_max=8, vmem_budget=12 * 1024 * 1024):
    """Largest G that divides BN, fits the (double-buffered) VMEM budget and
    keeps >= 2 grid steps so both v7x TensorCores get work (when possible)."""
    best = 1
    for g in range(1, min(group_max, bn) + 1):
        if bn % g != 0 or bn // g < 2:
            continue
        if 2 * g * per_image_bytes > vmem_budget:
            continue
        best = g
    return best


# ---------------------------------------------------------------------------
# Wrapper (plain-JAX glue: schedule lookup, weight folding, pallas_call)
# ---------------------------------------------------------------------------
def ray_diffuser_forward(features, rays, ndc_coordinates, t, epsilon,
                         params, alphas_cumprod, *,
                         matmul_dtype=jnp.bfloat16, group_max=8):
    """
    features:        (B, N, F, H, W)
    rays:            (B, N, ray_dim, H, W)
    ndc_coordinates: (B, N, 2, H, W)
    t:               (B,) int32
    epsilon:         (B, N, ray_dim, H, W)
    Returns (epsilon_pred (B, N, ray_dim, H, W), epsilon).
    """
    B, N, F, H, W = features.shape
    ray_dim = rays.shape[2]
    BN, HW = B * N, H * W
    assert HW % 128 == 0, "H*W must be a multiple of 128 for lane-dense tiles"

    # Channel-first flat layout: pure reshapes, no transposes.  bf16 for the
    # big features tensor halves its HBM read traffic and feeds the MXU at its
    # native bf16 rate; everything elementwise stays f32.
    feats_cf = features.reshape(BN, F, HW).astype(matmul_dtype)
    rays_cf = rays.reshape(BN, ray_dim, HW).astype(jnp.float32)
    eps_cf = epsilon.reshape(BN, ray_dim, HW).astype(jnp.float32)
    ndc_cf = ndc_coordinates.reshape(BN, 2, HW).astype(jnp.float32)

    # Noise schedule scalars, one per image (SMEM inputs).
    ab = alphas_cumprod[t]                                   # (B,)
    sa = jnp.sqrt(ab)
    sb = jnp.sqrt(1.0 - ab)
    sa = jnp.broadcast_to(sa[:, None], (B, N)).reshape(BN).astype(jnp.float32)
    sb = jnp.broadcast_to(sb[:, None], (B, N)).reshape(BN).astype(jnp.float32)

    # Fold scratch.input_conv into the head (Wc = w1 @ w2r, b = b1 @ w2r + b2)
    # and pre-transpose everything for the channel-first kernel.
    w1, b1, w2f, w2r, w2n, b2 = params
    wf_t = w2f.T.astype(matmul_dtype)                        # (R, F)
    wc_t = (w1 @ w2r).T.astype(matmul_dtype)                 # (R, R)
    wn_t = w2n.T.astype(jnp.float32)                         # (R, 2)
    bias = (b1 @ w2r + b2).T.astype(jnp.float32)             # (R, 1)

    per_image_bytes = HW * (
        F * jnp.dtype(matmul_dtype).itemsize       # features
        + (2 * ray_dim + 2) * 4                    # rays + eps + ndc (f32)
        + ray_dim * 4                              # output (f32)
    )
    G = _pick_group(BN, per_image_bytes, group_max=group_max)
    grid = (BN // G,)

    out = pl.pallas_call(
        ray_diffuser_kernel,
        out_shape=jax.ShapeDtypeStruct((BN, ray_dim, HW), jnp.float32),
        grid=grid,
        in_specs=[
            pl.BlockSpec(memory_space=pltpu.MemorySpace.SMEM),       # sa
            pl.BlockSpec(memory_space=pltpu.MemorySpace.SMEM),       # sb
            pl.BlockSpec((G, F, HW), lambda i: (i, 0, 0)),           # features
            pl.BlockSpec((G, ray_dim, HW), lambda i: (i, 0, 0)),     # rays
            pl.BlockSpec((G, ray_dim, HW), lambda i: (i, 0, 0)),     # epsilon
            pl.BlockSpec((G, 2, HW), lambda i: (i, 0, 0)),           # ndc
            pl.BlockSpec((ray_dim, F), lambda i: (0, 0)),            # wf_t
            pl.BlockSpec((ray_dim, ray_dim), lambda i: (0, 0)),      # wc_t
            pl.BlockSpec((ray_dim, 2), lambda i: (0, 0)),            # wn_t
            pl.BlockSpec((ray_dim, 1), lambda i: (0, 0)),            # bias
        ],
        out_specs=pl.BlockSpec((G, ray_dim, HW), lambda i: (i, 0, 0)),
        compiler_params=pltpu.CompilerParams(
            dimension_semantics=("parallel",),
            vmem_limit_bytes=32 * 1024 * 1024,    # fits v7x (64 MiB physical)
        ),
    )(sa, sb, feats_cf, rays_cf, eps_cf, ndc_cf, wf_t, wc_t, wn_t, bias)

    epsilon_pred = out.reshape(B, N, ray_dim, H, W)          # pure reshape
    return epsilon_pred, epsilon


# ---------------------------------------------------------------------------
# Pure-JAX f32 reference (unfused, mirrors the PyTorch forward)
# ---------------------------------------------------------------------------
def ray_diffuser_reference(features, rays, ndc_coordinates, t, epsilon,
                           params, alphas_cumprod):
    w1, b1, w2f, w2r, w2n, b2 = params
    B = features.shape[0]
    ab = alphas_cumprod[t].reshape(B, 1, 1, 1, 1)
    rays_noisy = jnp.sqrt(ab) * rays + jnp.sqrt(1.0 - ab) * epsilon

    def cl(x):  # (B, N, C, H, W) -> (B, N, H, W, C)
        return x.transpose(0, 1, 3, 4, 2)

    ray_repr = cl(rays_noisy) @ w1 + b1
    scene = jnp.concatenate([cl(features), ray_repr, cl(ndc_coordinates)], -1)
    w2 = jnp.concatenate([w2f, w2r, w2n], axis=0)
    out = scene @ w2 + b2
    return out.transpose(0, 1, 4, 2, 3), epsilon


# ---------------------------------------------------------------------------
# Deterministic setup & run
# ---------------------------------------------------------------------------
if __name__ == "__main__":
    # Module config (small/synthetic):
    #   depth_resolution=1, use_homogeneous=False, diffuse_depths=False,
    #   cond_depth_mask=False, append_ndc=True, max_num_images=1, width=16
    #   => ray_dim = 3 + 3 * 1**2 = 6, input_dim = 2*feature_dim + 2
    B, N = 2, 1
    H = W = 16                        # width x width patch grid
    feature_dim = 16                  # synthetic (real DINO would be 768)
    ray_dim = 6
    input_dim = 2 * feature_dim + 2   # append_ndc=True

    key = jax.random.PRNGKey(0)
    k_feat, k_rays, k_ndc, k_eps, k_w1, k_b1, k_w2, k_b2 = jax.random.split(key, 8)

    features = jax.random.normal(k_feat, (B, N, feature_dim, H, W), jnp.float32)
    rays = jax.random.normal(k_rays, (B, N, ray_dim, H, W), jnp.float32)
    ndc = jax.random.normal(k_ndc, (B, N, 2, H, W), jnp.float32)
    epsilon = jax.random.normal(k_eps, (B, N, ray_dim, H, W), jnp.float32)
    t = jnp.array([10, 50], dtype=jnp.int32)

    # NoiseScheduler (DDPM linear-beta schedule, 100 steps)
    num_steps = 100
    betas = jnp.linspace(1e-4, 0.02, num_steps, dtype=jnp.float32)
    alphas_cumprod = jnp.cumprod(1.0 - betas)

    # scratch.input_conv: Linear(ray_dim, feature_dim)   (x @ W + b convention)
    w1 = (jax.random.normal(k_w1, (ray_dim, feature_dim), jnp.float32)
          * (1.0 / jnp.sqrt(ray_dim)))
    b1 = jax.random.normal(k_b1, (1, feature_dim), jnp.float32) * 0.01

    # ray_predictor stand-in head: Linear(input_dim, ray_dim), split across the
    # channel-concat [features | ray_repr | ndc].
    w2 = (jax.random.normal(k_w2, (input_dim, ray_dim), jnp.float32)
          * (1.0 / jnp.sqrt(input_dim)))
    b2 = jax.random.normal(k_b2, (1, ray_dim), jnp.float32) * 0.01
    w2f = w2[:feature_dim]
    w2r = w2[feature_dim:2 * feature_dim]
    w2n = w2[2 * feature_dim:]
    params = (w1, b1, w2f, w2r, w2n, b2)

    epsilon_pred, eps_out = ray_diffuser_forward(
        features, rays, ndc, t, epsilon, params, alphas_cumprod)
    jax.block_until_ready(epsilon_pred)

    assert epsilon_pred.shape == (B, N, ray_dim, H, W)
    assert eps_out.shape == (B, N, ray_dim, H, W)

    # Validate against the unfused f32 reference (tolerance covers the bf16
    # matmul inputs and the changed fp32 rounding order of the folding).
    ref_pred, _ = ray_diffuser_reference(
        features, rays, ndc, t, epsilon, params, alphas_cumprod)
    max_err = float(jnp.max(jnp.abs(epsilon_pred - ref_pred)))
    assert jnp.allclose(epsilon_pred, ref_pred, rtol=5e-2, atol=5e-2), max_err

    print("KERNEL_OK")
</pallas_src>

<mosaic_0001>
module attributes {stable_mosaic.version = 11 : i64} {
  func.func @ray_diffuser_kernel(%arg0: i32, %arg1: memref<2xf32, #tpu.memory_space<smem>>, %arg2: memref<2xf32, #tpu.memory_space<smem>>, %arg3: memref<1x16x256xbf16, #tpu.memory_space<vmem>>, %arg4: memref<1x6x256xf32, #tpu.memory_space<vmem>>, %arg5: memref<1x6x256xf32, #tpu.memory_space<vmem>>, %arg6: memref<1x2x256xf32, #tpu.memory_space<vmem>>, %arg7: memref<6x16xbf16, #tpu.memory_space<vmem>>, %arg8: memref<6x6xbf16, #tpu.memory_space<vmem>>, %arg9: memref<6x2xf32, #tpu.memory_space<vmem>>, %arg10: memref<6x1xf32, #tpu.memory_space<vmem>>, %arg11: memref<1x6x256xf32, #tpu.memory_space<vmem>>) attributes {dimension_semantics = [#tpu.dimension_semantics<parallel>], iteration_bounds = array<i64: 2>, scalar_prefetch = 0 : i64, scratch_operands = 0 : i64, tpu.core_type = #tpu.core_type<tc>, window_params = [{transform_indices = @transform_0, window_bounds = array<i64: 2>}, {transform_indices = @transform_1, window_bounds = array<i64: 2>}, {transform_indices = @transform_2, window_bounds = array<i64: 1, 16, 256>}, {transform_indices = @transform_3, window_bounds = array<i64: 1, 6, 256>}, {transform_indices = @transform_4, window_bounds = array<i64: 1, 6, 256>}, {transform_indices = @transform_5, window_bounds = array<i64: 1, 2, 256>}, {pipeline_mode = #tpu.pipeline_mode<synchronous>, transform_indices = @transform_6, window_bounds = array<i64: 6, 16>}, {pipeline_mode = #tpu.pipeline_mode<synchronous>, transform_indices = @transform_7, window_bounds = array<i64: 6, 6>}, {pipeline_mode = #tpu.pipeline_mode<synchronous>, transform_indices = @transform_8, window_bounds = array<i64: 6, 2>}, {pipeline_mode = #tpu.pipeline_mode<synchronous>, transform_indices = @transform_9, window_bounds = array<i64: 6, 1>}, {transform_indices = @transform_10, window_bounds = array<i64: 1, 6, 256>}]} {
    %c0 = arith.constant 0 : index
    %c0_0 = arith.constant 0 : index
    %0 = vector.load %arg7[%c0, %c0_0] : memref<6x16xbf16, #tpu.memory_space<vmem>>, vector<6x16xbf16>
    %c0_1 = arith.constant 0 : index
    %c0_2 = arith.constant 0 : index
    %1 = vector.load %arg8[%c0_1, %c0_2] : memref<6x6xbf16, #tpu.memory_space<vmem>>, vector<6x6xbf16>
    %c0_3 = arith.constant 0 : index
    %c0_4 = arith.constant 0 : index
    %2 = vector.load %arg9[%c0_3, %c0_4] : memref<6x2xf32, #tpu.memory_space<vmem>>, vector<6x2xf32>
    %c0_5 = arith.constant 0 : index
    %c0_6 = arith.constant 0 : index
    %3 = vector.load %arg10[%c0_5, %c0_6] : memref<6x1xf32, #tpu.memory_space<vmem>>, vector<6x1xf32>
    %4 = vector.extract_strided_slice %2 {offsets = [0, 0], sizes = [6, 1], strides = [1, 1]} : vector<6x2xf32> to vector<6x1xf32>
    %5 = vector.extract_strided_slice %2 {offsets = [0, 1], sizes = [6, 1], strides = [1, 1]} : vector<6x2xf32> to vector<6x1xf32>
    %c1_i32 = arith.constant 1 : i32
    %6 = arith.muli %arg0, %c1_i32 : i32
    %c0_i32 = arith.constant 0 : i32
    %7 = arith.addi %6, %c0_i32 : i32
    %8 = arith.index_cast %7 : i32 to index
    %9 = memref.load %arg1[%8] : memref<2xf32, #tpu.memory_space<smem>>
    %10 = arith.index_cast %7 : i32 to index
    %11 = memref.load %arg2[%10] : memref<2xf32, #tpu.memory_space<smem>>
    %c0_7 = arith.constant 0 : index
    %c0_8 = arith.constant 0 : index
    %c0_9 = arith.constant 0 : index
    %12 = vector.load %arg4[%c0_7, %c0_8, %c0_9] : memref<1x6x256xf32, #tpu.memory_space<vmem>>, vector<1x6x256xf32>
    %13 = vector.shape_cast %12 : vector<1x6x256xf32> to vector<6x256xf32>
    %14 = vector.broadcast %9 : f32 to vector<6x256xf32>
    %15 = arith.mulf %14, %13 : vector<6x256xf32>
    %c0_10 = arith.constant 0 : index
    %c0_11 = arith.constant 0 : index
    %c0_12 = arith.constant 0 : index
    %16 = vector.load %arg5[%c0_10, %c0_11, %c0_12] : memref<1x6x256xf32, #tpu.memory_space<vmem>>, vector<1x6x256xf32>
    %17 = vector.shape_cast %16 : vector<1x6x256xf32> to vector<6x256xf32>
    %18 = vector.broadcast %11 : f32 to vector<6x256xf32>
    %19 = arith.mulf %18, %17 : vector<6x256xf32>
    %20 = arith.addf %15, %19 : vector<6x256xf32>
    %c0_13 = arith.constant 0 : index
    %c0_14 = arith.constant 0 : index
    %c0_15 = arith.constant 0 : index
    %21 = vector.load %arg3[%c0_13, %c0_14, %c0_15] : memref<1x16x256xbf16, #tpu.memory_space<vmem>>, vector<1x16x256xbf16>
    %22 = vector.shape_cast %21 : vector<1x16x256xbf16> to vector<16x256xbf16>
    %cst = arith.constant dense<0.000000e+00> : vector<6x256xf32>
    %23 = tpu.matmul %0, %22, %cst {dimension_numbers = #tpu.dot_dimension_numbers<[1], [0], [0], [1], [0, 0, 1, 1], [], []>} : vector<6x16xbf16>, vector<16x256xbf16>, vector<6x256xf32> -> vector<6x256xf32>
    %24 = arith.truncf %20 : vector<6x256xf32> to vector<6x256xbf16>
    %cst_16 = arith.constant dense<0.000000e+00> : vector<6x256xf32>
    %25 = tpu.matmul %1, %24, %cst_16 {dimension_numbers = #tpu.dot_dimension_numbers<[1], [0], [0], [1], [0, 0, 1, 1], [], []>} : vector<6x6xbf16>, vector<6x256xbf16>, vector<6x256xf32> -> vector<6x256xf32>
    %26 = arith.addf %23, %25 : vector<6x256xf32>
    %c0_17 = arith.constant 0 : index
    %c0_18 = arith.constant 0 : index
    %c0_19 = arith.constant 0 : index
    %27 = vector.load %arg6[%c0_17, %c0_18, %c0_19] : memref<1x2x256xf32, #tpu.memory_space<vmem>>, vector<1x2x256xf32>
    %28 = vector.shape_cast %27 : vector<1x2x256xf32> to vector<2x256xf32>
    %29 = vector.extract_strided_slice %28 {offsets = [0, 0], sizes = [1, 256], strides = [1, 1]} : vector<2x256xf32> to vector<1x256xf32>
    %30 = vector.broadcast %4 : vector<6x1xf32> to vector<6x256xf32>
    %31 = vector.broadcast %29 : vector<1x256xf32> to vector<6x256xf32>
    %32 = arith.mulf %30, %31 : vector<6x256xf32>
    %33 = vector.extract_strided_slice %28 {offsets = [1, 0], sizes = [1, 256], strides = [1, 1]} : vector<2x256xf32> to vector<1x256xf32>
    %34 = vector.broadcast %5 : vector<6x1xf32> to vector<6x256xf32>
    %35 = vector.broadcast %33 : vector<1x256xf32> to vector<6x256xf32>
    %36 = arith.mulf %34, %35 : vector<6x256xf32>
    %37 = arith.addf %32, %36 : vector<6x256xf32>
    %38 = vector.broadcast %3 : vector<6x1xf32> to vector<6x256xf32>
    %39 = arith.addf %37, %38 : vector<6x256xf32>
    %40 = arith.addf %26, %39 : vector<6x256xf32>
    %c0_20 = arith.constant 0 : index
    %c0_21 = arith.constant 0 : index
    %c0_22 = arith.constant 0 : index
    %41 = vector.load %arg11[%c0_20, %c0_21, %c0_22] : memref<1x6x256xf32, #tpu.memory_space<vmem>>, vector<1x6x256xf32>
    %42 = vector.shape_cast %41 : vector<1x6x256xf32> to vector<6x256xf32>
    %43 = vector.shape_cast %40 : vector<6x256xf32> to vector<1x6x256xf32>
    tpu.vector_store %arg11[%c0_20, %c0_21, %c0_22], %43 {strides = array<i32>} : memref<1x6x256xf32, #tpu.memory_space<vmem>>, vector<1x6x256xf32>,
    return
  }
  func.func @transform_0(%arg0: i32) -> i32 {
    %c0_i32 = arith.constant 0 : i32
    %c0_i32_0 = arith.constant 0 : i32
    return %c0_i32 : i32
  }
  func.func @transform_1(%arg0: i32) -> i32 {
    %c0_i32 = arith.constant 0 : i32
    %c0_i32_0 = arith.constant 0 : i32
    return %c0_i32 : i32
  }
  func.func @transform_2(%arg0: i32) -> (i32, i32, i32) {
    %c0_i32 = arith.constant 0 : i32
    %c0_i32_0 = arith.constant 0 : i32
    %c0_i32_1 = arith.constant 0 : i32
    return %arg0, %c0_i32, %c0_i32_0 : i32, i32, i32
  }
  func.func @transform_3(%arg0: i32) -> (i32, i32, i32) {
    %c0_i32 = arith.constant 0 : i32
    %c0_i32_0 = arith.constant 0 : i32
    %c0_i32_1 = arith.constant 0 : i32
    return %arg0, %c0_i32, %c0_i32_0 : i32, i32, i32
  }
  func.func @transform_4(%arg0: i32) -> (i32, i32, i32) {
    %c0_i32 = arith.constant 0 : i32
    %c0_i32_0 = arith.constant 0 : i32
    %c0_i32_1 = arith.constant 0 : i32
    return %arg0, %c0_i32, %c0_i32_0 : i32, i32, i32
  }
  func.func @transform_5(%arg0: i32) -> (i32, i32, i32) {
    %c0_i32 = arith.constant 0 : i32
    %c0_i32_0 = arith.constant 0 : i32
    %c0_i32_1 = arith.constant 0 : i32
    return %arg0, %c0_i32, %c0_i32_0 : i32, i32, i32
  }
  func.func @transform_6(%arg0: i32) -> (i32, i32) {
    %c0_i32 = arith.constant 0 : i32
    %c0_i32_0 = arith.constant 0 : i32
    %c0_i32_1 = arith.constant 0 : i32
    return %c0_i32, %c0_i32_0 : i32, i32
  }
  func.func @transform_7(%arg0: i32) -> (i32, i32) {
    %c0_i32 = arith.constant 0 : i32
    %c0_i32_0 = arith.constant 0 : i32
    %c0_i32_1 = arith.constant 0 : i32
    return %c0_i32, %c0_i32_0 : i32, i32
  }
  func.func @transform_8(%arg0: i32) -> (i32, i32) {
    %c0_i32 = arith.constant 0 : i32
    %c0_i32_0 = arith.constant 0 : i32
    %c0_i32_1 = arith.constant 0 : i32
    return %c0_i32, %c0_i32_0 : i32, i32
  }
  func.func @transform_9(%arg0: i32) -> (i32, i32) {
    %c0_i32 = arith.constant 0 : i32
    %c0_i32_0 = arith.constant 0 : i32
    %c0_i32_1 = arith.constant 0 : i32
    return %c0_i32, %c0_i32_0 : i32, i32
  }
  func.func @transform_10(%arg0: i32) -> (i32, i32, i32) {
    %c0_i32 = arith.constant 0 : i32
    %c0_i32_0 = arith.constant 0 : i32
    %c0_i32_1 = arith.constant 0 : i32
    return %arg0, %c0_i32, %c0_i32_0 : i32, i32, i32
  }
}

</mosaic_0001>

<bundles_post_ra>
// kernel: tpu_custom_call.1
= control target key start
LH: loop header
LB: loop body
LE: loop exit
PB: predicated region body
PF: predicated region fallthrough
CT: control target
= control target key end

     0   :  { %15 = vsyncpa [#allocation3], 0  ;;  %s1023_s0 = inlined_call_operand.vmem [shape: f32[2], index: 0, kind: input, shape index: {}]   ;;  %s1024_s1 = inlined_call_operand.vmem [shape: f32[2], index: 1, kind: input, shape index: {}]   ;;  %s1025_s2 = inlined_call_operand.vmem [shape: bf16[2,16,256], index: 2, kind: input, shape index: {}]   ;;  %s1026_s3 = inlined_call_operand.vmem [shape: f32[2,6,256], index: 3, kind: input, shape index: {}]   ;;  %s1027_s4 = inlined_call_operand.vmem [shape: f32[2,6,256], index: 4, kind: input, shape index: {}]   ;;  %s1028_s5 = inlined_call_operand.vmem [shape: f32[2,2,256], index: 5, kind: input, shape index: {}]   ;;  %s1029_s6 = inlined_call_operand.vmem [shape: bf16[6,16], index: 6, kind: input, shape index: {}]   ;;  %s1030_s7 = inlined_call_operand.vmem [shape: bf16[6,6], index: 7, kind: input, shape index: {}]   ;;  %s1031_s8 = inlined_call_operand.vmem [shape: f32[6,2], index: 8, kind: input, shape index: {}]   ;;  %s1032_s9 = inlined_call_operand.vmem [shape: f32[6,1], index: 9, kind: input, shape index: {}]   ;;  %s1033_s10 = inlined_call_operand.vmem [shape: f32[2,6,256], index: 10, kind: output, shape index: {}]  }
   0x1   :  { %16 = vsyncpa [#allocation5], 0  ;;  %s928_s13 = smov 0  }
   0x2 LB: > { %s934_s14 = sadd.s32 4294967295, %s867_s13   ;;  %p756_p0 = scmp.ge.s32.totalorder %s867_s13, 1  ;;  %s867_s13 = sphi %s928_s13, %s22_s13  }
   0x3   : > { %p283_p1 = scmp.lt.s32.totalorder %s867_s13, 3  ;;  %s296_s17 = sshll.u32 %s1023_s0, 4  ;;  %s297_s17 = int_to_ptr.vmem [resolvable:$true] %s296_s17 }
   0x4   : > { %p1034_p3 = scmp.eq.s32.totalorder %s934_s14, 0  ;;  %s307_s21 = sshll.u32 %s1024_s1, 4  ;;  %s308_s21 = int_to_ptr.vmem [resolvable:$true] %s307_s21 }
   0x5   : > { %p941_p2 = pnand %p756_p0, %p283_p1  ;;  %s823_s23 = scalar_lea.vmem %s297_s17, 16 }
   0x6   : > { %p824_p6 = scmp.ne.s32.totalorder %s297_s17, %s823_s23  ;;  %p831_p10 = scmp.lt.s32.totalorder %s297_s17, %s297_s17 }
   0x7   : > { %s1036_s18 = scalar_select %p941_p2, 1, 0 }
   0x8   : > { %p793_p4 = pneg %p941_p2  ;;  %p832_p11 = scmp.lt.s32.totalorder %s823_s23, %s823_s23 }
   0xa   : > { %p953_p5 = pnand %p1034_p3, %p793_p4  ;;  %p833_p12 = por %p832_p11, %p831_p10 }
   0xc   : > { %p825_p7 = pneg %p953_p5 }
   0xe   : > { %p826_p8 = pnand %p825_p7, %p824_p6 }
  0x10   : > { %p827_p9 = pneg %p826_p8 }
  0x12   : > { %p834_p13 = pnand %p833_p12, %p827_p9 }
  0x14   : > { %837 = shalt.err (!%p834_p13)
}
  0x15   : > { %s869_s24 = smov [#allocation2]   ;;  %s838_s25 = scalar_lea.vmem %s308_s21, 16 }
  0x16   : > { %796 = dma.vmem_to_smem (!%p953_p5), %s297_s17, 16, %s869_s24, [#allocation3]  }
  0x17   : > { %p839_p0 = scmp.ne.s32.totalorder %s308_s21, %s838_s25  ;;  %p846_p3 = scmp.lt.s32.totalorder %s308_s21, %s308_s21 }
  0x18   : > { %p847_p2 = scmp.lt.s32.totalorder %s838_s25, %s838_s25 }
  0x19   : > { %p841_p1 = pnand %p839_p0, %p825_p7 }
  0x1a   : > { %p848_p6 = por %p847_p2, %p846_p3 }
  0x1b   : > { %p842_p4 = pneg %p841_p1 }
  0x1d   : > { %p849_p8 = pnand %p848_p6, %p842_p4 }
  0x1f   : > { %852 = shalt.err (!%p849_p8)
}
  0x20   : > { %s870_s26 = smov [#allocation4]   ;;  %p1038_p9 = scmp.ne.s32.totalorder %s1036_s18, 0 }
  0x21   : > { %799 = dma.vmem_to_smem (!%p953_p5), %s308_s21, 16, %s870_s26, [#allocation5]  }
  0x22   : > { %364 = sbr.rel (%p1038_p9) target bundleno = 264 (0x108), region = 60  ;;  %p1039_p10 = scmp.eq.s32.totalorder (!%p1038_p9), %s934_s14, 0 }
  0x27   : > { %858 = dma.done.wait (%p1039_p10), [#allocation3], 16   ;;  %p1040_p11 = pmov %p1039_p10 }
  0x28   : > { %p1041_p7 = pmov %p1039_p10 }
  0x29   : > { %860 = vsyncadd (%p1040_p11), [#allocation3], 4294967280 }
  0x2a   : > { %862 = dma.done.wait (%p1041_p7), [#allocation5], 16   ;;  %p1042_p2 = pmov %p1041_p7 }
  0x2c   : > { %864 = vsyncadd (%p1042_p2), [#allocation5], 4294967280 }
  0x2d   : > { %374 = sfence }
  0x2e   : > { %p422_p3 = scmp.lt.s32.totalorder %s934_s14, 1  ;;  %s975_s27 = sld [smem:[#allocation2 + %s934_s14]]  ;;  %v871_v0 = vmov 0   ;;  %v450_v1 = vld [vmem:[%s1031_s8] sm:$0x3f]  ;;  %v872_v9 = vmov 1   ;;  %v584_v23 = vlaneseq }
  0x2f   : > { %568 = vmatprep.mubr.bf16.mxu1 %v871_v0  ;;  %s978_s28 = sld [smem:[#allocation4 + %s934_s14]]  ;;  %513 = vmatprep.mubr.bf16.mxu0 %v871_v0  ;;  %v451_v2 = vld [vmem:[%s1032_s9] sm:$0x3f]  ;;  %vm532_vm0 = vcmask 130048   ;;  %vm474_vm1 = vcmask 1042432   ;;  %vm470_vm2 = vcmask 48128  }
  0x30   : > { %s1044_s14 = smov (!%p422_p3, %s934_s14), 1  ;;  %816 = vset.pattern.permute.xlu0 %v871_v0  ;;  %818 = vset.pattern.permute.xlu1 %v871_v0  ;;  %v448_v14 = vld [vmem:[%s1029_s6] sm:$0x7]  ;;  %v585_v24 = vshrl.u32 %v584_v23, 7 }
  0x31   : > { %580 = vperm.xlu0 %816, %v450_v1   ;;  %632 = vperm.xlu1 %818, %v451_v2   ;;  %s990_s15 = sshll.u32 %s1044_s14, 4  ;;  %v449_v22 = vld [vmem:[%s1030_s7] sm:$0x7]  ;;  %s783_s29 = sshll.u32 %s1044_s14, 2 }
  0x32   : > { %s426_s18 = scalar_lea.vmem %s1025_s2, %s990_s15  ;;  %s431_s21 = scalar_lea.vmem %s1026_s3, %s990_s15  ;;  %v586_v25 = vsub.s32 0, %v585_v24  ;;  %v610_v26 = vsub.s32 1, %v585_v24  ;;  %v590_v28 = vsub.s32 2, %v585_v24  ;;  %v614_v29 = vsub.s32 3, %v585_v24 }
  0x33   : > { %v820_v3 = vld [vmem:[%s426_s18 + $0x4] ss:$8 sps:$4 sm:$0xff]   ;;  %s436_s24 = scalar_lea.vmem %s1027_s4, %s990_s15  ;;  %v822_v5 = vld [vmem:[%s426_s18] ss:$8 sps:$4 sm:$0xff]   ;;  %s441_s12 = scalar_lea.vmem %s1028_s5, %s783_s29 }
  0x34   : > { %v456_v4 = vstv %s975_s27  ;;  %v455_v6 = vld [vmem:[%s431_s21 + $0x8] sm:$0x3f]  ;;  %550 = vmatprep.subr.bf16.mxu1 %v820_v3  ;;  %v454_v12 = vld [vmem:[%s431_s21] sm:$0x3f]  ;;  %s446_s17 = scalar_lea.vmem %s1033_s10, %s990_s15 }
  0x35   : > { %v460_v7 = vld [vmem:[%s436_s24 + $0x8] sm:$0x3f]  ;;  %v461_v8 = vstv %s978_s28  ;;  %817 = vset.pattern.permute.xlu0 %v872_v9  ;;  %v458_v10 = vmul.f32 %v456_v4, %v455_v6  ;;  %v459_v13 = vld [vmem:[%s436_s24] sm:$0x3f]  ;;  %551 = vmatpush1.bf16.msra.mxu1 %v822_v5  ;;  %v457_v15 = vmul.f32 %v456_v4, %v454_v12 }
  0x36   : > { %v463_v11 = vmul.f32 %v461_v8, %v460_v7  ;;  %605 = vperm.xlu0 %817, %v450_v1   ;;  %v462_v16 = vmul.f32 %v461_v8, %v459_v13  ;;  %v577_v27 = vld [vmem:[%s441_s12] sm:$0xf] }
  0x37   : > { %v587_v31 = vrot.slane %v577_v27, %v586_v25  ;;  %v611_v32 = vrot.slane %v577_v27, %v610_v26  ;;  %v591_v33 = vrot.slane %v577_v27, %v590_v28  ;;  %v615_v34 = vrot.slane %v577_v27, %v614_v29 }
  0x38   : > { %v465_v17 = vadd.f32 %v463_v11, %v458_v10  ;;  %v464_v18 = vadd.f32 %v462_v16, %v457_v15  ;;  %777 = vmatmul.mubr.msk.bf16.vlgmr.msra.gmra.mxu1 %vm532_vm0, %v448_v14 }
  0x39   : > { %v597_v35 = vrot.slane %v587_v31, %v586_v25  ;;  %v621_v36 = vrot.slane %v611_v32, %v610_v26  ;;  %v601_v38 = vrot.slane %v591_v33, %v586_v25  ;;  %v625_v39 = vrot.slane %v615_v34, %v610_v26 }
  0x3a   : > { %v469_v19 = vpack.c.bf16 %v465_v17, %v465_v17  ;;  %819 = vset.pattern.permute.xlu0 %v871_v0  ;;  %v468_v20 = vpack.c.bf16 %v464_v18, %v464_v18 }
  0x3c   : > { %773 = vmatprep.subr.msk.bf16.mxu0 %vm474_vm1, %v469_v19  ;;  %v476_v21 = vsel %vm474_vm1, %v468_v20, 0 }
  0x3d   : > { %496 = vmatpush1.bf16.msra.mxu0 %v476_v21 }
  0x40   : > { %774 = vmatmul.mubr.msk.bf16.vlgmr.msra.gmra.mxu0 %vm470_vm2, %v449_v22 }
  0xac   : > { %v581_v30 = vpop.permute.xlu0 %580  ;;  %v633_v48 = vpop.permute.xlu1 %632 }
  0xad   : > { %v602_v40 = vmul.f32 %v597_v35, %v581_v30  ;;  %v603_v43 = vmul.f32 %v601_v38, %v581_v30 }
  0xb1   : > { %v606_v37 = vpop.permute.xlu0 %605 }
  0xb2   : > { %v626_v41 = vmul.f32 %v621_v36, %v606_v37  ;;  %v627_v44 = vmul.f32 %v625_v39, %v606_v37 }
  0xb4   : > { %v628_v46 = vadd.f32 %v626_v41, %v602_v40  ;;  %v629_v49 = vadd.f32 %v627_v44, %v603_v43 }
  0xb6   : > { %v635_v52 = vadd.f32 %v633_v48, %v628_v46  ;;  %v636_v55 = vadd.f32 %v633_v48, %v629_v49 }
  0xf8   : > { %v570_v42 = vpop.f32.mrf.mxu1 }
  0xfa   : > { %v572_v45 = vpop.f32.mrf.mxu1 }
  0xfc   : > { %v574_v47 = vpop.f32.mrf.mxu1 }
  0xfe   : > { %v575_v50 = vpop.f32.mrf.mxu1 }
 0x100   : > { %v515_v51 = vpop.f32.mrf.mxu0 }
 0x101   : > { %v571_v53 = vadd.f32 %v570_v42, %v515_v51 }
 0x102   : > { %v517_v54 = vpop.f32.mrf.mxu0 }
 0x103   : > { %v637_v56 = vadd.f32 %v635_v52, %v571_v53  ;;  %v573_v57 = vadd.f32 %v572_v45, %v517_v54 }
 0x104   : > { %v519_v58 = vpop.f32.mrf.mxu0 }
 0x105   : > { %639 = vst [vmem:[%s446_s17] sm:$0x3f] %v637_v56  ;;  %v638_v59 = vadd.f32 %v636_v55, %v573_v57 }
 0x106   : > { %v520_v60 = vpop.f32.mrf.mxu0 }
 0x107   : > { %640 = vst [vmem:[%s446_s17 + $0x8] sm:$0x3f] %v638_v59 }
 0x108 PF: > { %s22_s13 = sadd.s32 1, %s867_s13  }
 0x109   : > { %p19_p5 = scmp.ge.s32.totalorder %s22_s13, 4  }
 0x10b   :  { %21 = sbr.rel (!%p19_p5) target bundleno = 2 (0x2), region = 108 }
 0x110   :  { %662 = vsyncpa [#allocation3], 1 }
 0x111   :  { %664 = vsyncpa [#allocation3 + $0x1], 1 }
 0x112   :  { %665 = vsyncpa [#allocation5], 1 }

</bundles_post_ra>
